<compile_context>
chip_gen: v7x
topology: tpu7x:2x2x1
jax: 0.10.0
libtpu: 0.0.40
codegen_flags: <defaults>
</compile_context>

<pallas_src>
import functools
import math

import jax
import jax.numpy as jnp
from jax.experimental import pallas as pl
from jax.experimental.pallas import tpu as pltpu


# ----------------------------------------------------------------------------
# Pallas kernel: (rows, K) @ (K, Cout_p) matmul + per-channel scale/bias + ReLU
# ----------------------------------------------------------------------------
def _matmul_bn_relu_kernel(x_ref, w_ref, scale_ref, bias_ref, o_ref, *, relu):
    acc = jnp.dot(x_ref[...], w_ref[...], preferred_element_type=jnp.float32)
    y = acc * scale_ref[...] + bias_ref[...]
    if relu:
        y = jnp.maximum(y, 0.0)
    o_ref[...] = y


def _matmul_bn_relu(cols2d, w2d, scale, bias, *, relu, tile_rows):
    """cols2d: (R, K) bf16, w2d: (K, Cout_p) bf16, scale/bias: (1, Cout_p) f32.

    R must be a multiple of tile_rows; Cout_p a multiple of 128.
    """
    R, K = cols2d.shape
    Cout_p = w2d.shape[1]
    grid = (R // tile_rows,)
    kern = functools.partial(_matmul_bn_relu_kernel, relu=relu)
    return pl.pallas_call(
        kern,
        out_shape=jax.ShapeDtypeStruct((R, Cout_p), jnp.float32),
        grid=grid,
        in_specs=[
            pl.BlockSpec((tile_rows, K), lambda i: (i, 0)),      # row tile of im2col
            pl.BlockSpec((K, Cout_p), lambda i: (0, 0)),         # full weight (resident)
            pl.BlockSpec((1, Cout_p), lambda i: (0, 0)),         # BN scale
            pl.BlockSpec((1, Cout_p), lambda i: (0, 0)),         # BN bias
        ],
        out_specs=pl.BlockSpec((tile_rows, Cout_p), lambda i: (i, 0)),
        compiler_params=pltpu.CompilerParams(
            dimension_semantics=("parallel",)),
    )(cols2d, w2d, scale, bias)


# ----------------------------------------------------------------------------
# im2col (done once, outside the kernel, lane-dense along 9*Cin)
# ----------------------------------------------------------------------------
def _im2col(xpad, Ho, Wo, stride, dilation):
    B, Hp, Wp, Cin = xpad.shape
    s, d = stride, dilation
    cols = []
    for ky in range(3):
        for kx in range(3):
            sl = xpad[:,
                      ky * d: ky * d + (Ho - 1) * s + 1: s,
                      kx * d: kx * d + (Wo - 1) * s + 1: s,
                      :]
            cols.append(sl)
    return jnp.concatenate(cols, axis=-1)          # (B, Ho, Wo, 9*Cin)


def _round_up(x, m):
    return ((x + m - 1) // m) * m


# ----------------------------------------------------------------------------
# myrebnconv: parameter construction + forward
# ----------------------------------------------------------------------------
def init_myrebnconv(key, in_ch=3, out_ch=1, stride=1, padding=1, dilation=1,
                    eps=1e-5):
    """Conv2d(3x3) + BatchNorm2d (eval-mode, folded) + ReLU."""
    # TODO(synk): groups != 1 is not supported (grouped conv has no clean
    #             single-matmul Pallas mapping here); padding_mode is
    #             undefined in the reference __init__ -> zero padding assumed.
    k_w, k_b = jax.random.split(key)
    w = jax.random.normal(k_w, (3, 3, in_ch, out_ch), jnp.float32) * (
        1.0 / math.sqrt(9 * in_ch))
    conv_bias = jax.random.normal(k_b, (out_ch,), jnp.float32) * 0.01
    # Eval-mode BatchNorm running stats: gamma=1, beta=0, mean=0, var=1.
    gamma = jnp.ones((out_ch,), jnp.float32)
    beta = jnp.zeros((out_ch,), jnp.float32)
    running_mean = jnp.zeros((out_ch,), jnp.float32)
    running_var = jnp.ones((out_ch,), jnp.float32)
    scale = gamma / jnp.sqrt(running_var + eps)
    bias = beta + (conv_bias - running_mean) * scale
    return dict(w=w, scale=scale, bias=bias,
                stride=stride, padding=padding, dilation=dilation)


def myrebnconv_apply(params, x_nchw, *, tile_rows=256):
    """Forward: ReLU(BN(Conv2d(x))). Input/output are NCHW (PyTorch layout)."""
    s = params["stride"]
    p = params["padding"]
    d = params["dilation"]
    w = params["w"]                                  # (3, 3, Cin, Cout)
    Cin, Cout = w.shape[2], w.shape[3]

    x = jnp.transpose(x_nchw, (0, 2, 3, 1)).astype(jnp.float32)   # NHWC
    B, H, W, _ = x.shape
    Ho = (H + 2 * p - d * 2 - 1) // s + 1
    Wo = (W + 2 * p - d * 2 - 1) // s + 1

    xpad = jnp.pad(x, ((0, 0), (p, p), (p, p), (0, 0)))
    cols = _im2col(xpad, Ho, Wo, s, d)               # (B, Ho, Wo, 9*Cin)
    K = 9 * Cin
    cols2 = cols.reshape(B * Ho * Wo, K).astype(jnp.bfloat16)

    # Pad rows to a multiple of the row tile (zero rows are sliced off later).
    R0 = B * Ho * Wo
    # NOTE: for large inputs sweep tile_rows in the 512-1024 range; 256 keeps
    # the example grid > 1 while each buffer stays far under the VMEM budget.
    Rpad = _round_up(max(R0, tile_rows), tile_rows)
    if Rpad != R0:
        cols2 = jnp.pad(cols2, ((0, Rpad - R0), (0, 0)))

    # Pad the output-channel axis to a multiple of 128 -> lane-dense stores.
    Cout_p = _round_up(Cout, 128)
    w2 = w.reshape(K, Cout).astype(jnp.bfloat16)
    if Cout_p != Cout:
        w2 = jnp.pad(w2, ((0, 0), (0, Cout_p - Cout)))
    scale_p = jnp.pad(params["scale"], (0, Cout_p - Cout)).reshape(1, Cout_p)
    bias_p = jnp.pad(params["bias"], (0, Cout_p - Cout)).reshape(1, Cout_p)

    out2 = _matmul_bn_relu(cols2, w2, scale_p, bias_p, relu=True,
                           tile_rows=tile_rows)
    out = out2[:R0, :Cout].reshape(B, Ho, Wo, Cout)
    return jnp.transpose(out, (0, 3, 1, 2))          # back to NCHW


# ----------------------------------------------------------------------------
# Plain-JAX reference (same bf16 rounding of matmul inputs) for verification
# ----------------------------------------------------------------------------
def myrebnconv_reference(params, x_nchw):
    s, p, d = params["stride"], params["padding"], params["dilation"]
    x = jnp.transpose(x_nchw, (0, 2, 3, 1)).astype(jnp.bfloat16)
    w = params["w"].astype(jnp.bfloat16)
    y = jax.lax.conv_general_dilated(
        x, w, window_strides=(s, s), padding=((p, p), (p, p)),
        rhs_dilation=(d, d),
        dimension_numbers=("NHWC", "HWIO", "NHWC"),
        preferred_element_type=jnp.float32)
    y = y * params["scale"] + params["bias"]
    y = jnp.maximum(y, 0.0)
    return jnp.transpose(y, (0, 3, 1, 2))


# ----------------------------------------------------------------------------
if __name__ == "__main__":
    key = jax.random.PRNGKey(0)
    k_p1, k_p2, k_x = jax.random.split(key, 3)

    B, Cin, H, W = 2, 4, 16, 16
    x = jax.random.uniform(k_x, (B, Cin, H, W), jnp.float32)

    # Config 1: stride=1, padding=1, dilation=1 (module defaults, Cout=8).
    params1 = init_myrebnconv(k_p1, in_ch=Cin, out_ch=8,
                              stride=1, padding=1, dilation=1)
    fwd1 = jax.jit(functools.partial(myrebnconv_apply, params1))
    y1 = jax.block_until_ready(fwd1(x))
    assert y1.shape == (B, 8, H, W)
    r1 = jax.block_until_ready(jax.jit(
        functools.partial(myrebnconv_reference, params1))(x))
    assert bool(jnp.all(jnp.isfinite(y1)))
    assert bool(jnp.allclose(y1, r1, atol=1e-3, rtol=1e-3))

    # Config 2: stride=2, dilation=2, padding=2 (exercises strided/dilated path).
    params2 = init_myrebnconv(k_p2, in_ch=Cin, out_ch=16,
                              stride=2, padding=2, dilation=2)
    fwd2 = jax.jit(functools.partial(myrebnconv_apply, params2))
    y2 = jax.block_until_ready(fwd2(x))
    assert y2.shape == (B, 16, H // 2, W // 2)
    r2 = jax.block_until_ready(jax.jit(
        functools.partial(myrebnconv_reference, params2))(x))
    assert bool(jnp.all(jnp.isfinite(y2)))
    assert bool(jnp.allclose(y2, r2, atol=1e-3, rtol=1e-3))

    print("KERNEL_OK")
</pallas_src>

<mosaic_0001>
module attributes {stable_mosaic.version = 11 : i64} {
  func.func @_matmul_bn_relu_kernel(%arg0: i32, %arg1: memref<256x36xbf16, #tpu.memory_space<vmem>>, %arg2: memref<36x128xbf16, #tpu.memory_space<vmem>>, %arg3: memref<1x128xf32, #tpu.memory_space<vmem>>, %arg4: memref<1x128xf32, #tpu.memory_space<vmem>>, %arg5: memref<256x128xf32, #tpu.memory_space<vmem>>) attributes {dimension_semantics = [#tpu.dimension_semantics<parallel>], iteration_bounds = array<i64: 2>, scalar_prefetch = 0 : i64, scratch_operands = 0 : i64, tpu.core_type = #tpu.core_type<tc>, window_params = [{transform_indices = @transform_0, window_bounds = array<i64: 256, 36>}, {pipeline_mode = #tpu.pipeline_mode<synchronous>, transform_indices = @transform_1, window_bounds = array<i64: 36, 128>}, {pipeline_mode = #tpu.pipeline_mode<synchronous>, transform_indices = @transform_2, window_bounds = array<i64: 1, 128>}, {pipeline_mode = #tpu.pipeline_mode<synchronous>, transform_indices = @transform_3, window_bounds = array<i64: 1, 128>}, {transform_indices = @transform_4, window_bounds = array<i64: 256, 128>}]} {
    %c0 = arith.constant 0 : index
    %c0_0 = arith.constant 0 : index
    %0 = vector.load %arg1[%c0, %c0_0] : memref<256x36xbf16, #tpu.memory_space<vmem>>, vector<256x36xbf16>
    %c0_1 = arith.constant 0 : index
    %c0_2 = arith.constant 0 : index
    %1 = vector.load %arg2[%c0_1, %c0_2] : memref<36x128xbf16, #tpu.memory_space<vmem>>, vector<36x128xbf16>
    %cst = arith.constant dense<0.000000e+00> : vector<256x128xf32>
    %2 = tpu.matmul %0, %1, %cst {dimension_numbers = #tpu.dot_dimension_numbers<[1], [0], [0], [1], [0, 0, 1, 1], [], []>} : vector<256x36xbf16>, vector<36x128xbf16>, vector<256x128xf32> -> vector<256x128xf32>
    %c0_3 = arith.constant 0 : index
    %c0_4 = arith.constant 0 : index
    %3 = vector.load %arg3[%c0_3, %c0_4] : memref<1x128xf32, #tpu.memory_space<vmem>>, vector<1x128xf32>
    %4 = vector.broadcast %3 : vector<1x128xf32> to vector<256x128xf32>
    %5 = arith.mulf %2, %4 : vector<256x128xf32>
    %c0_5 = arith.constant 0 : index
    %c0_6 = arith.constant 0 : index
    %6 = vector.load %arg4[%c0_5, %c0_6] : memref<1x128xf32, #tpu.memory_space<vmem>>, vector<1x128xf32>
    %7 = vector.broadcast %6 : vector<1x128xf32> to vector<256x128xf32>
    %8 = arith.addf %5, %7 : vector<256x128xf32>
    %cst_7 = arith.constant 0.000000e+00 : f32
    %9 = vector.broadcast %cst_7 : f32 to vector<256x128xf32>
    %10 = arith.maximumf %8, %9 : vector<256x128xf32>
    %c0_8 = arith.constant 0 : index
    %c0_9 = arith.constant 0 : index
    %11 = vector.load %arg5[%c0_8, %c0_9] : memref<256x128xf32, #tpu.memory_space<vmem>>, vector<256x128xf32>
    tpu.vector_store %arg5[%c0_8, %c0_9], %10 {strides = array<i32>} : memref<256x128xf32, #tpu.memory_space<vmem>>, vector<256x128xf32>,
    return
  }
  func.func @transform_0(%arg0: i32) -> (i32, i32) {
    %c0_i32 = arith.constant 0 : i32
    %c0_i32_0 = arith.constant 0 : i32
    return %arg0, %c0_i32 : i32, i32
  }
  func.func @transform_1(%arg0: i32) -> (i32, i32) {
    %c0_i32 = arith.constant 0 : i32
    %c0_i32_0 = arith.constant 0 : i32
    %c0_i32_1 = arith.constant 0 : i32
    return %c0_i32, %c0_i32_0 : i32, i32
  }
  func.func @transform_2(%arg0: i32) -> (i32, i32) {
    %c0_i32 = arith.constant 0 : i32
    %c0_i32_0 = arith.constant 0 : i32
    %c0_i32_1 = arith.constant 0 : i32
    return %c0_i32, %c0_i32_0 : i32, i32
  }
  func.func @transform_3(%arg0: i32) -> (i32, i32) {
    %c0_i32 = arith.constant 0 : i32
    %c0_i32_0 = arith.constant 0 : i32
    %c0_i32_1 = arith.constant 0 : i32
    return %c0_i32, %c0_i32_0 : i32, i32
  }
  func.func @transform_4(%arg0: i32) -> (i32, i32) {
    %c0_i32 = arith.constant 0 : i32
    %c0_i32_0 = arith.constant 0 : i32
    return %arg0, %c0_i32 : i32, i32
  }
}

</mosaic_0001>

<bundles_post_ra>
// kernel: myrebnconv_apply.1
= control target key start
LH: loop header
LB: loop body
LE: loop exit
PB: predicated region body
PF: predicated region fallthrough
CT: control target
= control target key end

     0   :  { %s919_s15 = smov 0   ;;  %s1091_s0 = inlined_call_operand.vmem [shape: bf16[512,36], index: 0, kind: input, shape index: {}]   ;;  %s1092_s1 = inlined_call_operand.vmem [shape: bf16[36,128], index: 1, kind: input, shape index: {}]   ;;  %s1093_s2 = inlined_call_operand.vmem [shape: f32[1,128], index: 2, kind: input, shape index: {}]   ;;  %s1094_s3 = inlined_call_operand.vmem [shape: f32[1,128], index: 3, kind: input, shape index: {}]   ;;  %s1095_s4 = inlined_call_operand.vmem [shape: f32[512,128], index: 4, kind: output, shape index: {}]  }
   0x1 LB: > { %s746_s16 = sadd.s32 4294967295, %s892_s15   ;;  %p750_p0 = scmp.ge.s32.totalorder %s892_s15, 1  ;;  %s892_s15 = sphi %s919_s15, %s14_s15  }
   0x2   : > { %p163_p1 = scmp.lt.s32.totalorder %s892_s15, 3 }
   0x4   : > { %p164_p2 = pnand %p750_p0, %p163_p1 }
   0x5   : > { %v867_v0 = vld [vmem:[%s1092_s1] sm:$0xff] (!%p164_p2)   ;;  %v868_v1 = vld [vmem:[%s1092_s1 + $0x8] sm:$0xff] (!%p164_p2)   ;;  %s751_s21 = sshll.u32 (!%p164_p2), %s746_s16, 5  ;;  %v869_v2 = vld [vmem:[%s1092_s1 + $0x10] ss:$0 sps:$4 sm:$0x33] (!%p164_p2)  }
   0x6   : > { %167 = sbr.rel (%p164_p2) target bundleno = 265 (0x109), region = 36  ;;  %813 = vmatprep.subr.bf16.mxu0 (!%p164_p2), %v867_v0  ;;  %851 = vmatprep.subr.bf16.mxu1 (!%p164_p2), %v867_v0  ;;  %p190_p3 = scmp.lt.s32.totalorder (!%p164_p2), %s751_s21, 63  ;;  %vm383_vm0 = vcmask (!%p164_p2), 1041408   ;;  %vm334_vm1 = vcmask (!%p164_p2), 293888   ;;  %v979_v20 = vld [vmem:[%s1093_s2] ss:$0 sm:$0xff] (!%p164_p2) }
   0x7   : > { %814 = vmatpush3.bf16.msra.mxu0 (!%p164_p2), %v867_v0  ;;  %854 = vmatpush3.bf16.msra.mxu1 (!%p164_p2), %v867_v0  ;;  %v385_v3 = vsel (!%p164_p2), %vm383_vm0, %v869_v2, 0  ;;  %v984_v22 = vld [vmem:[%s1094_s3] ss:$0 sm:$0xff] (!%p164_p2) }
   0x8   : > { %815 = vmatprep.subr.bf16.mxu0 (!%p164_p2), %v868_v1  ;;  %852 = vmatprep.subr.bf16.mxu1 (!%p164_p2), %v868_v1 }
   0xb   : > { %816 = vmatpush3.bf16.msra.mxu0 (!%p164_p2), %v868_v1  ;;  %855 = vmatpush3.bf16.msra.mxu1 (!%p164_p2), %v868_v1 }
   0xc   : > { %857 = vmatprep.subr.msk.bf16.mxu0 (!%p164_p2), %vm383_vm0, %v869_v2  ;;  %858 = vmatprep.subr.msk.bf16.mxu1 (!%p164_p2), %vm383_vm0, %v869_v2 }
   0xd   : > { %s1097_s21 = smov (!%p190_p3, %s751_s21), 63 }
   0xe   : > { %s752_s24 = sshll.u32 %s1097_s21, 2  ;;  %s754_s6 = sshll.u32 %s1097_s21, 3 }
   0xf   : > { %s942_s27 = scalar_lea.vmem %s1091_s0, %s752_s24  ;;  %818 = vmatpush3.bf16.msra.mxu0 %v385_v3  ;;  %856 = vmatpush3.bf16.msra.mxu1 %v385_v3  ;;  %s998_s9 = scalar_lea.vmem %s1095_s4, %s754_s6 }
  0x10   : > { %v870_v4 = vld [vmem:[%s942_s27] sm:$0xff]   ;;  %v872_v6 = vld [vmem:[%s942_s27 + $0x8] sm:$0xff]   ;;  %v874_v8 = vld [vmem:[%s942_s27 + $0x10] sm:$0xff]  }
  0x11   : > { %v871_v5 = vld [vmem:[%s942_s27 + $0x40] sm:$0xff]   ;;  %819 = vmatprep.mubr.msk.bf16.mxu0 %vm334_vm1, %v870_v4  ;;  %v873_v7 = vld [vmem:[%s942_s27 + $0x48] sm:$0xff]   ;;  %v875_v9 = vld [vmem:[%s942_s27 + $0x50] sm:$0xff]  }
  0x12   : > { %835 = vmatprep.mubr.msk.bf16.mxu1 %vm334_vm1, %v871_v5  ;;  %820 = vmatmul.mubr.msk.bf16.vlgmr.msra.gmra.mrb[0].mxu0 %vm334_vm1, %v872_v6  ;;  %v876_v10 = vld [vmem:[%s942_s27 + $0x18] sm:$0xff]   ;;  %v878_v12 = vld [vmem:[%s942_s27 + $0x20] sm:$0xff]   ;;  %v880_v14 = vld [vmem:[%s942_s27 + $0x28] sm:$0xff]  }
  0x13   : > { %836 = vmatmul.mubr.msk.bf16.vlgmr.msra.gmra.mrb[0].mxu1 %vm334_vm1, %v873_v7  ;;  %823 = vmatprep.mubr.msk.bf16.mxu0 %vm334_vm1, %v874_v8  ;;  %v877_v11 = vld [vmem:[%s942_s27 + $0x58] sm:$0xff]   ;;  %v879_v13 = vld [vmem:[%s942_s27 + $0x60] sm:$0xff]   ;;  %v881_v15 = vld [vmem:[%s942_s27 + $0x68] sm:$0xff]  }
  0x14   : > { %839 = vmatprep.mubr.msk.bf16.mxu1 %vm334_vm1, %v875_v9  ;;  %v882_v16 = vld [vmem:[%s942_s27 + $0x30] sm:$0xff]   ;;  %v884_v18 = vld [vmem:[%s942_s27 + $0x38] sm:$0xff]  }
  0x15   : > { %v883_v17 = vld [vmem:[%s942_s27 + $0x70] sm:$0xff]   ;;  %v885_v19 = vld [vmem:[%s942_s27 + $0x78] sm:$0xff]  }
  0x1a   : > { %824 = vmatmul.mubr.msk.bf16.gmra.mrb[4].mxu0 %vm334_vm1, %v876_v10 }
  0x1b   : > { %840 = vmatmul.mubr.msk.bf16.gmra.mrb[4].mxu1 %vm334_vm1, %v877_v11  ;;  %827 = vmatprep.mubr.msk.bf16.mxu0 %vm334_vm1, %v878_v12 }
  0x1c   : > { %843 = vmatprep.mubr.msk.bf16.mxu1 %vm334_vm1, %v879_v13 }
  0x22   : > { %828 = vmatmul.mubr.msk.bf16.gmra.mrb[8].mxu0 %vm334_vm1, %v880_v14 }
  0x23   : > { %844 = vmatmul.mubr.msk.bf16.gmra.mrb[8].mxu1 %vm334_vm1, %v881_v15  ;;  %831 = vmatprep.mubr.msk.bf16.mxu0 %vm334_vm1, %v882_v16 }
  0x24   : > { %847 = vmatprep.mubr.msk.bf16.mxu1 %vm334_vm1, %v883_v17 }
  0x2a   : > { %832 = vmatmul.mubr.msk.bf16.gmra.mrb[12].mxu0 %vm334_vm1, %v884_v18 }
  0x2b   : > { %848 = vmatmul.mubr.msk.bf16.gmra.mrb[12].mxu1 %vm334_vm1, %v885_v19 }
  0xe5   : > { %v821_v21 = vpop.f32.mrb[0].mxu0 }
  0xe6   : > { %v837_v23 = vpop.f32.mrb[0].mxu1  ;;  %v557_v24 = vmul.f32 %v821_v21, %v979_v20  ;;  %v421_v26 = vpop.f32.mrb[1].mxu0 }
  0xe7   : > { %v573_v25 = vmul.f32 %v837_v23, %v979_v20  ;;  %v485_v27 = vpop.f32.mrb[1].mxu1  ;;  %v555_v28 = vmul.f32 %v979_v20, %v421_v26  ;;  %v822_v30 = vpop.f32.mrb[2].mxu0 }
  0xe8   : > { %v571_v29 = vmul.f32 %v979_v20, %v485_v27  ;;  %v838_v31 = vpop.f32.mrb[2].mxu1  ;;  %v596_v32 = vadd.f32 %v984_v22, %v557_v24  ;;  %v558_v34 = vmul.f32 %v822_v30, %v979_v20  ;;  %v424_v36 = vpop.f32.mrb[3].mxu0 }
  0xe9   : > { %v612_v33 = vadd.f32 %v984_v22, %v573_v25  ;;  %v574_v35 = vmul.f32 %v838_v31, %v979_v20  ;;  %v488_v37 = vpop.f32.mrb[3].mxu1  ;;  %v594_v38 = vadd.f32 %v984_v22, %v555_v28  ;;  %v556_v40 = vmul.f32 %v979_v20, %v424_v36 }
  0xea   : > { %v610_v39 = vadd.f32 %v984_v22, %v571_v29  ;;  %v572_v41 = vmul.f32 %v979_v20, %v488_v37  ;;  %v628_v42 = vmax.f32 %v596_v32, 0.0  ;;  %v597_v44 = vadd.f32 %v984_v22, %v558_v34 }
  0xeb   : > { %v644_v43 = vmax.f32 %v612_v33, 0.0  ;;  %v613_v45 = vadd.f32 %v984_v22, %v574_v35  ;;  %v626_v46 = vmax.f32 %v594_v38, 0.0  ;;  %v595_v48 = vadd.f32 %v984_v22, %v556_v40 }
  0xec   : > { %v642_v47 = vmax.f32 %v610_v39, 0.0  ;;  %v611_v49 = vadd.f32 %v984_v22, %v572_v41  ;;  %660 = vst [vmem:[%s998_s9 + $0x10] sm:$0xff] %v628_v42  ;;  %v629_v50 = vmax.f32 %v597_v44, 0.0 }
  0xed   : > { %676 = vst [vmem:[%s998_s9 + $0x90] sm:$0xff] %v644_v43  ;;  %v645_v51 = vmax.f32 %v613_v45, 0.0  ;;  %658 = vst [vmem:[%s998_s9] sm:$0xff] %v626_v46  ;;  %v627_v52 = vmax.f32 %v595_v48, 0.0  ;;  %v825_v54 = vpop.f32.mrb[4].mxu0 }
  0xee   : > { %674 = vst [vmem:[%s998_s9 + $0x80] sm:$0xff] %v642_v47  ;;  %v643_v53 = vmax.f32 %v611_v49, 0.0  ;;  %v841_v55 = vpop.f32.mrb[4].mxu1  ;;  %661 = vst [vmem:[%s998_s9 + $0x18] sm:$0xff] %v629_v50  ;;  %v561_v56 = vmul.f32 %v825_v54, %v979_v20  ;;  %v437_v58 = vpop.f32.mrb[5].mxu0 }
  0xef   : > { %677 = vst [vmem:[%s998_s9 + $0x98] sm:$0xff] %v645_v51  ;;  %v577_v57 = vmul.f32 %v841_v55, %v979_v20  ;;  %v501_v59 = vpop.f32.mrb[5].mxu1  ;;  %659 = vst [vmem:[%s998_s9 + $0x8] sm:$0xff] %v627_v52  ;;  %v559_v60 = vmul.f32 %v979_v20, %v437_v58  ;;  %v826_v62 = vpop.f32.mrb[6].mxu0 }
  0xf0   : > { %675 = vst [vmem:[%s998_s9 + $0x88] sm:$0xff] %v643_v53  ;;  %v575_v61 = vmul.f32 %v979_v20, %v501_v59  ;;  %v842_v63 = vpop.f32.mrb[6].mxu1  ;;  %v600_v0 = vadd.f32 %v984_v22, %v561_v56  ;;  %v562_v2 = vmul.f32 %v826_v62, %v979_v20  ;;  %v440_v4 = vpop.f32.mrb[7].mxu0 }
  0xf1   : > { %v616_v1 = vadd.f32 %v984_v22, %v577_v57  ;;  %v578_v3 = vmul.f32 %v842_v63, %v979_v20  ;;  %v504_v5 = vpop.f32.mrb[7].mxu1  ;;  %v598_v6 = vadd.f32 %v984_v22, %v559_v60  ;;  %v560_v8 = vmul.f32 %v979_v20, %v440_v4 }
  0xf2   : > { %v614_v7 = vadd.f32 %v984_v22, %v575_v61  ;;  %v576_v9 = vmul.f32 %v979_v20, %v504_v5  ;;  %v632_v10 = vmax.f32 %v600_v0, 0.0  ;;  %v601_v12 = vadd.f32 %v984_v22, %v562_v2 }
  0xf3   : > { %v648_v11 = vmax.f32 %v616_v1, 0.0  ;;  %v617_v13 = vadd.f32 %v984_v22, %v578_v3  ;;  %v630_v14 = vmax.f32 %v598_v6, 0.0  ;;  %v599_v16 = vadd.f32 %v984_v22, %v560_v8 }
  0xf4   : > { %v646_v15 = vmax.f32 %v614_v7, 0.0  ;;  %v615_v17 = vadd.f32 %v984_v22, %v576_v9  ;;  %664 = vst [vmem:[%s998_s9 + $0x30] sm:$0xff] %v632_v10  ;;  %v633_v18 = vmax.f32 %v601_v12, 0.0 }
  0xf5   : > { %680 = vst [vmem:[%s998_s9 + $0xb0] sm:$0xff] %v648_v11  ;;  %v649_v19 = vmax.f32 %v617_v13, 0.0  ;;  %662 = vst [vmem:[%s998_s9 + $0x20] sm:$0xff] %v630_v14  ;;  %v631_v21 = vmax.f32 %v599_v16, 0.0  ;;  %v829_v24 = vpop.f32.mrb[8].mxu0 }
  0xf6   : > { %678 = vst [vmem:[%s998_s9 + $0xa0] sm:$0xff] %v646_v15  ;;  %v647_v23 = vmax.f32 %v615_v17, 0.0  ;;  %v845_v25 = vpop.f32.mrb[8].mxu1  ;;  %665 = vst [vmem:[%s998_s9 + $0x38] sm:$0xff] %v633_v18  ;;  %v565_v26 = vmul.f32 %v829_v24, %v979_v20  ;;  %v453_v28 = vpop.f32.mrb[9].mxu0 }
  0xf7   : > { %681 = vst [vmem:[%s998_s9 + $0xb8] sm:$0xff] %v649_v19  ;;  %v581_v27 = vmul.f32 %v845_v25, %v979_v20  ;;  %v517_v29 = vpop.f32.mrb[9].mxu1  ;;  %663 = vst [vmem:[%s998_s9 + $0x28] sm:$0xff] %v631_v21  ;;  %v563_v30 = vmul.f32 %v979_v20, %v453_v28  ;;  %v830_v32 = vpop.f32.mrb[10].mxu0 }
  0xf8   : > { %679 = vst [vmem:[%s998_s9 + $0xa8] sm:$0xff] %v647_v23  ;;  %v579_v31 = vmul.f32 %v979_v20, %v517_v29  ;;  %v846_v33 = vpop.f32.mrb[10].mxu1  ;;  %v604_v34 = vadd.f32 %v984_v22, %v565_v26  ;;  %v566_v36 = vmul.f32 %v830_v32, %v979_v20  ;;  %v456_v38 = vpop.f32.mrb[11].mxu0 }
  0xf9   : > { %v620_v35 = vadd.f32 %v984_v22, %v581_v27  ;;  %v582_v37 = vmul.f32 %v846_v33, %v979_v20  ;;  %v520_v39 = vpop.f32.mrb[11].mxu1  ;;  %v602_v40 = vadd.f32 %v984_v22, %v563_v30  ;;  %v564_v42 = vmul.f32 %v979_v20, %v456_v38 }
  0xfa   : > { %v618_v41 = vadd.f32 %v984_v22, %v579_v31  ;;  %v580_v43 = vmul.f32 %v979_v20, %v520_v39  ;;  %v636_v44 = vmax.f32 %v604_v34, 0.0  ;;  %v605_v46 = vadd.f32 %v984_v22, %v566_v36 }
  0xfb   : > { %v652_v45 = vmax.f32 %v620_v35, 0.0  ;;  %v621_v47 = vadd.f32 %v984_v22, %v582_v37  ;;  %v634_v48 = vmax.f32 %v602_v40, 0.0  ;;  %v603_v50 = vadd.f32 %v984_v22, %v564_v42 }
  0xfc   : > { %v650_v49 = vmax.f32 %v618_v41, 0.0  ;;  %v619_v51 = vadd.f32 %v984_v22, %v580_v43  ;;  %668 = vst [vmem:[%s998_s9 + $0x50] sm:$0xff] %v636_v44  ;;  %v637_v52 = vmax.f32 %v605_v46, 0.0 }
  0xfd   : > { %684 = vst [vmem:[%s998_s9 + $0xd0] sm:$0xff] %v652_v45  ;;  %v653_v53 = vmax.f32 %v621_v47, 0.0  ;;  %666 = vst [vmem:[%s998_s9 + $0x40] sm:$0xff] %v634_v48  ;;  %v635_v54 = vmax.f32 %v603_v50, 0.0  ;;  %v833_v56 = vpop.f32.mrb[12].mxu0 }
  0xfe   : > { %682 = vst [vmem:[%s998_s9 + $0xc0] sm:$0xff] %v650_v49  ;;  %v651_v55 = vmax.f32 %v619_v51, 0.0  ;;  %v849_v57 = vpop.f32.mrb[12].mxu1  ;;  %669 = vst [vmem:[%s998_s9 + $0x58] sm:$0xff] %v637_v52  ;;  %v569_v58 = vmul.f32 %v833_v56, %v979_v20  ;;  %v469_v60 = vpop.f32.mrb[13].mxu0 }
  0xff   : > { %685 = vst [vmem:[%s998_s9 + $0xd8] sm:$0xff] %v653_v53  ;;  %v585_v59 = vmul.f32 %v849_v57, %v979_v20  ;;  %v533_v61 = vpop.f32.mrb[13].mxu1  ;;  %667 = vst [vmem:[%s998_s9 + $0x48] sm:$0xff] %v635_v54  ;;  %v567_v62 = vmul.f32 %v979_v20, %v469_v60  ;;  %v834_v0 = vpop.f32.mrb[14].mxu0 }
 0x100   : > { %683 = vst [vmem:[%s998_s9 + $0xc8] sm:$0xff] %v651_v55  ;;  %v583_v63 = vmul.f32 %v979_v20, %v533_v61  ;;  %v850_v1 = vpop.f32.mrb[14].mxu1  ;;  %v608_v2 = vadd.f32 %v984_v22, %v569_v58  ;;  %v570_v4 = vmul.f32 %v834_v0, %v979_v20  ;;  %v472_v6 = vpop.f32.mrb[15].mxu0 }
 0x101   : > { %v624_v3 = vadd.f32 %v984_v22, %v585_v59  ;;  %v586_v5 = vmul.f32 %v850_v1, %v979_v20  ;;  %v536_v7 = vpop.f32.mrb[15].mxu1  ;;  %v606_v8 = vadd.f32 %v984_v22, %v567_v62  ;;  %v568_v10 = vmul.f32 %v979_v20, %v472_v6 }
 0x102   : > { %v622_v9 = vadd.f32 %v984_v22, %v583_v63  ;;  %v584_v11 = vmul.f32 %v979_v20, %v536_v7  ;;  %v640_v12 = vmax.f32 %v608_v2, 0.0  ;;  %v609_v14 = vadd.f32 %v984_v22, %v570_v4 }
 0x103   : > { %v656_v13 = vmax.f32 %v624_v3, 0.0  ;;  %v625_v15 = vadd.f32 %v984_v22, %v586_v5  ;;  %v638_v16 = vmax.f32 %v606_v8, 0.0  ;;  %v607_v18 = vadd.f32 %v984_v22, %v568_v10 }
 0x104   : > { %v654_v17 = vmax.f32 %v622_v9, 0.0  ;;  %v623_v19 = vadd.f32 %v984_v22, %v584_v11  ;;  %672 = vst [vmem:[%s998_s9 + $0x70] sm:$0xff] %v640_v12  ;;  %v641_v21 = vmax.f32 %v609_v14, 0.0 }
 0x105   : > { %688 = vst [vmem:[%s998_s9 + $0xf0] sm:$0xff] %v656_v13  ;;  %v657_v20 = vmax.f32 %v625_v15, 0.0  ;;  %670 = vst [vmem:[%s998_s9 + $0x60] sm:$0xff] %v638_v16  ;;  %v639_v23 = vmax.f32 %v607_v18, 0.0 }
 0x106   : > { %686 = vst [vmem:[%s998_s9 + $0xe0] sm:$0xff] %v654_v17  ;;  %v655_v24 = vmax.f32 %v623_v19, 0.0  ;;  %673 = vst [vmem:[%s998_s9 + $0x78] sm:$0xff] %v641_v21 }
 0x107   : > { %689 = vst [vmem:[%s998_s9 + $0xf8] sm:$0xff] %v657_v20  ;;  %671 = vst [vmem:[%s998_s9 + $0x68] sm:$0xff] %v639_v23 }
 0x108   : > { %687 = vst [vmem:[%s998_s9 + $0xe8] sm:$0xff] %v655_v24 }
 0x109 PF: > { %s14_s15 = sadd.s32 1, %s892_s15  }
 0x10a   : > { %p11_p4 = scmp.ge.s32.totalorder %s14_s15, 4  }
 0x10c   :  { %13 = sbr.rel (!%p11_p4) target bundleno = 1 (0x1), region = 66 }

</bundles_post_ra>
